<compile_context>
chip_gen: v5e
topology: v5e:2x2
jax: 0.10.0
libtpu: 0.0.40
codegen_flags: <defaults>
</compile_context>

<pallas_src>
import functools

import jax
import jax.numpy as jnp
from jax.experimental import pallas as pl
from jax.experimental.pallas import tpu as pltpu

_LANE = 128   # vreg lane width  (last dim)
_SUBLANE = 8  # vreg sublane width (second-to-last dim)


def _round_up(n, m):
    return ((n + m - 1) // m) * m


def _leaky_relu(x, negative_slope=0.1):
    # Valid for slope in (0, 1): max(x, s*x) == x for x>=0, s*x for x<0.
    return jnp.maximum(x, negative_slope * x)


def soft_q_kernel(x_ref, w1_ref, b1_ref, w2_ref, b2_ref, w3_ref, b3_ref, o_ref):
    mm_dtype = w1_ref.dtype  # bf16 (or f32) matmul inputs, f32 accumulation
    # layer 1 (K = in_dim, no lane padding on x; cast to matmul dtype in-kernel)
    h = jnp.dot(x_ref[...].astype(mm_dtype), w1_ref[...],
                preferred_element_type=jnp.float32)
    h = _leaky_relu(h + b1_ref[...])
    # layer 2
    h = jnp.dot(h.astype(mm_dtype), w2_ref[...], preferred_element_type=jnp.float32)
    h = _leaky_relu(h + b2_ref[...])
    # layer 3 (output columns kept at true `hidden` width -> lean HBM writeback)
    h = jnp.dot(h.astype(mm_dtype), w3_ref[...], preferred_element_type=jnp.float32)
    h = _leaky_relu(h + b3_ref[...])
    o_ref[...] = h.astype(o_ref.dtype)


def prepare_soft_q_params(params, matmul_dtype=jnp.bfloat16):
    """One-time (per parameter update) padding + cast of the SoftQNet weights.

    params = (w1, b1, w2, b2, w3, b3) with wi: [in, out], bi: [1, out].
    Returns weights laid out for the kernel:
      w1: [in_dim, hid_pad], w2: [hid_pad, hid_pad], w3: [hid_pad, hidden]
      b1/b2: [1, hid_pad] f32, b3: [1, hidden] f32
    Padded hidden columns are zero, so padded activations stay exactly zero.
    """
    w1, b1, w2, b2, w3, b3 = params
    in_dim, hidden = w1.shape[0], w3.shape[1]
    hid_pad = _round_up(hidden, _LANE)

    def pad_w(w, rows, cols):
        out = jnp.zeros((rows, cols), matmul_dtype)
        return out.at[: w.shape[0], : w.shape[1]].set(w.astype(matmul_dtype))

    def pad_b(b, cols):
        out = jnp.zeros((1, cols), jnp.float32)
        return out.at[:, : b.shape[1]].set(b.astype(jnp.float32))

    w1p = pad_w(w1, in_dim, hid_pad)     # no row padding: K stays = in_dim
    w2p = pad_w(w2, hid_pad, hid_pad)
    w3p = pad_w(w3, hid_pad, hidden)     # output columns at true width
    b1p, b2p = pad_b(b1, hid_pad), pad_b(b2, hid_pad)
    b3p = pad_b(b3, hidden)
    return (w1p, b1p, w2p, b2p, w3p, b3p)


@functools.partial(jax.jit, static_argnames=("block_batch",))
def soft_q_forward(q_input, padded_params, *, block_batch=1024):
    """SoftQNet forward. `padded_params` must come from prepare_soft_q_params()."""
    w1p, b1p, w2p, b2p, w3p, b3p = padded_params
    batch, in_dim = q_input.shape
    assert w1p.shape[0] == in_dim, "q_input feature dim must match w1 rows"
    hid_pad = w2p.shape[0]
    hidden = w3p.shape[1]

    # Batch tile: multiple of 8 sublanes, capped by the (rounded-up) batch.
    tb = min(_round_up(block_batch, _SUBLANE), _round_up(batch, _SUBLANE))
    grid = (pl.cdiv(batch, tb),)   # ragged last block is masked by Pallas

    x_spec = pl.BlockSpec((tb, in_dim), lambda i: (i, 0))
    w1_spec = pl.BlockSpec((in_dim, hid_pad), lambda i: (0, 0))   # grid-resident
    w2_spec = pl.BlockSpec((hid_pad, hid_pad), lambda i: (0, 0))  # grid-resident
    w3_spec = pl.BlockSpec((hid_pad, hidden), lambda i: (0, 0))   # grid-resident
    b12_spec = pl.BlockSpec((1, hid_pad), lambda i: (0, 0))       # grid-resident
    b3_spec = pl.BlockSpec((1, hidden), lambda i: (0, 0))         # grid-resident
    out_spec = pl.BlockSpec((tb, hidden), lambda i: (i, 0))

    return pl.pallas_call(
        soft_q_kernel,
        out_shape=jax.ShapeDtypeStruct((batch, hidden), jnp.float32),
        grid=grid,
        in_specs=[x_spec, w1_spec, b12_spec, w2_spec, b12_spec, w3_spec, b3_spec],
        out_specs=out_spec,
        compiler_params=pltpu.CompilerParams(
            dimension_semantics=("parallel",)),   # lets v7x shard batch over 2 TCs
    )(q_input, w1p, b1p, w2p, b2p, w3p, b3p)


def init_soft_q_params(key, num_inputs, num_actions, hidden_dim):
    """Deterministic init mirroring torch.nn.Linear default: U(-1/sqrt(fan_in), 1/sqrt(fan_in))."""
    input_dim = num_inputs + num_actions
    dims = [(input_dim, hidden_dim), (hidden_dim, hidden_dim), (hidden_dim, hidden_dim)]
    params = []
    for fan_in, fan_out in dims:
        key, kw, kb = jax.random.split(key, 3)
        bound = 1.0 / (fan_in ** 0.5)
        w = jax.random.uniform(kw, (fan_in, fan_out), jnp.float32, -bound, bound)
        b = jax.random.uniform(kb, (1, fan_out), jnp.float32, -bound, bound)
        params += [w, b]
    return tuple(params)


def _reference_forward(q_input, params, matmul_dtype=jnp.float32):
    """Pure-JAX reference; optionally mirrors the kernel's bf16 matmul-input cast."""
    w1, b1, w2, b2, w3, b3 = params
    dt = matmul_dtype
    h = _leaky_relu(jnp.dot(q_input.astype(dt), w1.astype(dt),
                            preferred_element_type=jnp.float32) + b1)
    h = _leaky_relu(jnp.dot(h.astype(dt), w2.astype(dt),
                            preferred_element_type=jnp.float32) + b2)
    h = _leaky_relu(jnp.dot(h.astype(dt), w3.astype(dt),
                            preferred_element_type=jnp.float32) + b3)
    return h


if __name__ == "__main__":
    num_inputs, num_actions, hidden_dim = 4, 4, 32
    key = jax.random.PRNGKey(0)
    key, kparams = jax.random.split(key)
    params = init_soft_q_params(kparams, num_inputs, num_actions, hidden_dim)

    # Pad/cast once, outside the hot loop (the RL inner loop would reuse these).
    padded_params = prepare_soft_q_params(params, matmul_dtype=jnp.bfloat16)
    padded_params = tuple(jax.block_until_ready(p) for p in padded_params)

    ok = True
    # tiny demo shape + a multi-tile, non-multiple-of-8 batch to exercise the
    # ragged/masked grid edge and the 1024-row tile.
    for batch in (2, 2050):
        key, kx = jax.random.split(key)
        # q_input = concat(state, action) along feature axis: [batch, num_inputs+num_actions]
        q_input = jax.random.normal(kx, (batch, num_inputs + num_actions), jnp.float32)

        out = jax.block_until_ready(soft_q_forward(q_input, padded_params))
        assert out.shape == (batch, hidden_dim)

        # Exact-ish check vs a reference using the same bf16 matmul-input cast.
        ref_matched = _reference_forward(q_input, params, matmul_dtype=jnp.bfloat16)
        ok &= bool(jnp.allclose(out, ref_matched, atol=1e-4, rtol=1e-4))

        # Loose check vs the pure-f32 module semantics (bf16 matmul-input rounding only).
        ref_f32 = _reference_forward(q_input, params, matmul_dtype=jnp.float32)
        ok &= bool(jnp.allclose(out, ref_f32, atol=5e-2, rtol=5e-2))

    assert ok, "mismatch vs pure-JAX reference"
    print("KERNEL_OK")
</pallas_src>

<mosaic_0001>
module attributes {stable_mosaic.version = 11 : i64} {
  func.func @soft_q_kernel(%arg0: i32, %arg1: memref<8x8xf32, #tpu.memory_space<vmem>>, %arg2: memref<8x128xbf16, #tpu.memory_space<vmem>>, %arg3: memref<1x128xf32, #tpu.memory_space<vmem>>, %arg4: memref<128x128xbf16, #tpu.memory_space<vmem>>, %arg5: memref<1x128xf32, #tpu.memory_space<vmem>>, %arg6: memref<128x32xbf16, #tpu.memory_space<vmem>>, %arg7: memref<1x32xf32, #tpu.memory_space<vmem>>, %arg8: memref<8x32xf32, #tpu.memory_space<vmem>>) attributes {dimension_semantics = [#tpu.dimension_semantics<parallel>], iteration_bounds = array<i64: 1>, scalar_prefetch = 0 : i64, scratch_operands = 0 : i64, tpu.core_type = #tpu.core_type<tc>, window_params = [{transform_indices = @transform_0, window_bounds = array<i64: 8, 8>}, {pipeline_mode = #tpu.pipeline_mode<synchronous>, transform_indices = @transform_1, window_bounds = array<i64: 8, 128>}, {pipeline_mode = #tpu.pipeline_mode<synchronous>, transform_indices = @transform_2, window_bounds = array<i64: 1, 128>}, {pipeline_mode = #tpu.pipeline_mode<synchronous>, transform_indices = @transform_3, window_bounds = array<i64: 128, 128>}, {pipeline_mode = #tpu.pipeline_mode<synchronous>, transform_indices = @transform_4, window_bounds = array<i64: 1, 128>}, {pipeline_mode = #tpu.pipeline_mode<synchronous>, transform_indices = @transform_5, window_bounds = array<i64: 128, 32>}, {pipeline_mode = #tpu.pipeline_mode<synchronous>, transform_indices = @transform_6, window_bounds = array<i64: 1, 32>}, {transform_indices = @transform_7, window_bounds = array<i64: 8, 32>}]} {
    %c0 = arith.constant 0 : index
    %c0_0 = arith.constant 0 : index
    %0 = vector.load %arg1[%c0, %c0_0] : memref<8x8xf32, #tpu.memory_space<vmem>>, vector<8x8xf32>
    %1 = arith.truncf %0 : vector<8x8xf32> to vector<8x8xbf16>
    %c0_1 = arith.constant 0 : index
    %c0_2 = arith.constant 0 : index
    %2 = vector.load %arg2[%c0_1, %c0_2] : memref<8x128xbf16, #tpu.memory_space<vmem>>, vector<8x128xbf16>
    %cst = arith.constant dense<0.000000e+00> : vector<8x128xf32>
    %3 = tpu.matmul %1, %2, %cst {dimension_numbers = #tpu.dot_dimension_numbers<[1], [0], [0], [1], [0, 0, 1, 1], [], []>} : vector<8x8xbf16>, vector<8x128xbf16>, vector<8x128xf32> -> vector<8x128xf32>
    %c0_3 = arith.constant 0 : index
    %c0_4 = arith.constant 0 : index
    %4 = vector.load %arg3[%c0_3, %c0_4] : memref<1x128xf32, #tpu.memory_space<vmem>>, vector<1x128xf32>
    %5 = vector.broadcast %4 : vector<1x128xf32> to vector<8x128xf32>
    %6 = arith.addf %3, %5 : vector<8x128xf32>
    %cst_5 = arith.constant 1.000000e-01 : f32
    %7 = vector.broadcast %cst_5 : f32 to vector<8x128xf32>
    %8 = arith.mulf %7, %6 : vector<8x128xf32>
    %9 = arith.maximumf %6, %8 : vector<8x128xf32>
    %10 = arith.truncf %9 : vector<8x128xf32> to vector<8x128xbf16>
    %c0_6 = arith.constant 0 : index
    %c0_7 = arith.constant 0 : index
    %11 = vector.load %arg4[%c0_6, %c0_7] : memref<128x128xbf16, #tpu.memory_space<vmem>>, vector<128x128xbf16>
    %cst_8 = arith.constant dense<0.000000e+00> : vector<8x128xf32>
    %12 = tpu.matmul %10, %11, %cst_8 {dimension_numbers = #tpu.dot_dimension_numbers<[1], [0], [0], [1], [0, 0, 1, 1], [], []>} : vector<8x128xbf16>, vector<128x128xbf16>, vector<8x128xf32> -> vector<8x128xf32>
    %c0_9 = arith.constant 0 : index
    %c0_10 = arith.constant 0 : index
    %13 = vector.load %arg5[%c0_9, %c0_10] : memref<1x128xf32, #tpu.memory_space<vmem>>, vector<1x128xf32>
    %14 = vector.broadcast %13 : vector<1x128xf32> to vector<8x128xf32>
    %15 = arith.addf %12, %14 : vector<8x128xf32>
    %cst_11 = arith.constant 1.000000e-01 : f32
    %16 = vector.broadcast %cst_11 : f32 to vector<8x128xf32>
    %17 = arith.mulf %16, %15 : vector<8x128xf32>
    %18 = arith.maximumf %15, %17 : vector<8x128xf32>
    %19 = arith.truncf %18 : vector<8x128xf32> to vector<8x128xbf16>
    %c0_12 = arith.constant 0 : index
    %c0_13 = arith.constant 0 : index
    %20 = vector.load %arg6[%c0_12, %c0_13] : memref<128x32xbf16, #tpu.memory_space<vmem>>, vector<128x32xbf16>
    %cst_14 = arith.constant dense<0.000000e+00> : vector<8x32xf32>
    %21 = tpu.matmul %19, %20, %cst_14 {dimension_numbers = #tpu.dot_dimension_numbers<[1], [0], [0], [1], [0, 0, 1, 1], [], []>} : vector<8x128xbf16>, vector<128x32xbf16>, vector<8x32xf32> -> vector<8x32xf32>
    %c0_15 = arith.constant 0 : index
    %c0_16 = arith.constant 0 : index
    %22 = vector.load %arg7[%c0_15, %c0_16] : memref<1x32xf32, #tpu.memory_space<vmem>>, vector<1x32xf32>
    %23 = vector.broadcast %22 : vector<1x32xf32> to vector<8x32xf32>
    %24 = arith.addf %21, %23 : vector<8x32xf32>
    %cst_17 = arith.constant 1.000000e-01 : f32
    %25 = vector.broadcast %cst_17 : f32 to vector<8x32xf32>
    %26 = arith.mulf %25, %24 : vector<8x32xf32>
    %27 = arith.maximumf %24, %26 : vector<8x32xf32>
    %c0_18 = arith.constant 0 : index
    %c0_19 = arith.constant 0 : index
    %28 = vector.load %arg8[%c0_18, %c0_19] : memref<8x32xf32, #tpu.memory_space<vmem>>, vector<8x32xf32>
    tpu.vector_store %arg8[%c0_18, %c0_19], %27 {strides = array<i32>} : memref<8x32xf32, #tpu.memory_space<vmem>>, vector<8x32xf32>,
    return
  }
  func.func @transform_0(%arg0: i32) -> (i32, i32) {
    %c0_i32 = arith.constant 0 : i32
    %c0_i32_0 = arith.constant 0 : i32
    return %arg0, %c0_i32 : i32, i32
  }
  func.func @transform_1(%arg0: i32) -> (i32, i32) {
    %c0_i32 = arith.constant 0 : i32
    %c0_i32_0 = arith.constant 0 : i32
    %c0_i32_1 = arith.constant 0 : i32
    return %c0_i32, %c0_i32_0 : i32, i32
  }
  func.func @transform_2(%arg0: i32) -> (i32, i32) {
    %c0_i32 = arith.constant 0 : i32
    %c0_i32_0 = arith.constant 0 : i32
    %c0_i32_1 = arith.constant 0 : i32
    return %c0_i32, %c0_i32_0 : i32, i32
  }
  func.func @transform_3(%arg0: i32) -> (i32, i32) {
    %c0_i32 = arith.constant 0 : i32
    %c0_i32_0 = arith.constant 0 : i32
    %c0_i32_1 = arith.constant 0 : i32
    return %c0_i32, %c0_i32_0 : i32, i32
  }
  func.func @transform_4(%arg0: i32) -> (i32, i32) {
    %c0_i32 = arith.constant 0 : i32
    %c0_i32_0 = arith.constant 0 : i32
    %c0_i32_1 = arith.constant 0 : i32
    return %c0_i32, %c0_i32_0 : i32, i32
  }
  func.func @transform_5(%arg0: i32) -> (i32, i32) {
    %c0_i32 = arith.constant 0 : i32
    %c0_i32_0 = arith.constant 0 : i32
    %c0_i32_1 = arith.constant 0 : i32
    return %c0_i32, %c0_i32_0 : i32, i32
  }
  func.func @transform_6(%arg0: i32) -> (i32, i32) {
    %c0_i32 = arith.constant 0 : i32
    %c0_i32_0 = arith.constant 0 : i32
    %c0_i32_1 = arith.constant 0 : i32
    return %c0_i32, %c0_i32_0 : i32, i32
  }
  func.func @transform_7(%arg0: i32) -> (i32, i32) {
    %c0_i32 = arith.constant 0 : i32
    %c0_i32_0 = arith.constant 0 : i32
    return %arg0, %c0_i32 : i32, i32
  }
}

</mosaic_0001>

<bundles_post_ra>
// kernel: soft_q_forward.1
= control target key start
LH: loop header
LB: loop body
LE: loop exit
PB: predicated region body
PF: predicated region fallthrough
CT: control target
= control target key end

     0   :  { %12 = vsyncpa [#allocation3], 0  ;;  %vm39_vm0 = vcmask 1043456   ;;  %vm35_vm1 = vcmask 64512   ;;  %vm226_vm2 = vcmask 261120   ;;  %s468_s0 = inlined_call_operand.vmem [shape: f32[2,8], index: 0, kind: input, shape index: {}]   ;;  %s469_s1 = inlined_call_operand.vmem [shape: bf16[8,128], index: 1, kind: input, shape index: {}]   ;;  %s470_s2 = inlined_call_operand.vmem [shape: f32[1,128], index: 2, kind: input, shape index: {}]   ;;  %s471_s3 = inlined_call_operand.vmem [shape: bf16[128,128], index: 3, kind: input, shape index: {}]   ;;  %s472_s4 = inlined_call_operand.vmem [shape: f32[1,128], index: 4, kind: input, shape index: {}]   ;;  %s473_s5 = inlined_call_operand.vmem [shape: bf16[128,32], index: 5, kind: input, shape index: {}]   ;;  %s474_s6 = inlined_call_operand.vmem [shape: f32[1,32], index: 6, kind: input, shape index: {}]   ;;  %s475_s7 = inlined_call_operand.hbm [shape: f32[2,32], index: 7, kind: output, shape index: {}]  }
   0x1   :  { %v30_v0 = vld [vmem:[%s469_s1] sm:$0xf]  ;;  %v318_v4 = vld [vmem:[%s471_s3 + $0x38] sm:$0xff]  ;;  %v317_v5 = vld [vmem:[%s471_s3 + $0x30] sm:$0xff] }
   0x2   :  { %v28_v1 = vld [vmem:[%s468_s0] sm:$0xff]  ;;  %v41_v2 = vsel %vm39_vm0, %v30_v0, 0  ;;  %127 = vmatpush.bf16.msra.mxu1 %v318_v4  ;;  %v316_v6 = vld [vmem:[%s471_s3 + $0x28] sm:$0xff]  ;;  %v314_v8 = vld [vmem:[%s471_s3 + $0x18] sm:$0xff] }
   0x3   :  { %v29_v3 = vpack.c.bf16 %v28_v1, %v28_v1  ;;  %50 = vmatpush.bf16.msra.mxu0 %v41_v2  ;;  %v315_v7 = vld [vmem:[%s471_s3 + $0x20] sm:$0xff]  ;;  %v313_v9 = vld [vmem:[%s471_s3 + $0x10] sm:$0xff]  ;;  %v312_v10 = vld [vmem:[%s471_s3 + $0x8] sm:$0xff] }
   0x4   :  { %v311_v11 = vld [vmem:[%s471_s3] sm:$0xff]  ;;  %v326_v12 = vld [vmem:[%s473_s5 + $0x38] sm:$0xff]  ;;  %v325_v13 = vld [vmem:[%s473_s5 + $0x30] sm:$0xff] }
   0x5   :  { %211 = vmatpush.bf16.msra.mxu2 %v326_v12  ;;  %v324_v14 = vld [vmem:[%s473_s5 + $0x28] sm:$0xff]  ;;  %v323_v15 = vld [vmem:[%s473_s5 + $0x20] sm:$0xff]  ;;  %v322_v16 = vld [vmem:[%s473_s5 + $0x18] sm:$0xff] }
   0x6   :  { %246 = vmatmul.msk.bf16.vlgmr.msra.gmra.mxu0 %vm35_vm1, %v29_v3  ;;  %128 = vmatpush.bf16.msra.mxu1 %v317_v5  ;;  %v321_v17 = vld [vmem:[%s473_s5 + $0x10] sm:$0xff]  ;;  %v330_v18 = vld [vmem:[%s470_s2] ss:$0 sm:$0xff]  ;;  %v320_v25 = vld [vmem:[%s473_s5 + $0x8] sm:$0xff] }
   0x7   :  { %v319_v26 = vld [vmem:[%s473_s5] sm:$0xff] }
   0x8   :  { %v331_v27 = vld [vmem:[%s472_s4] ss:$0 sm:$0xff] }
   0x9   :  { %212 = vmatpush.bf16.msra.mxu2 %v325_v13  ;;  %v332_v34 = vld [vmem:[%s474_s6] ss:$0 sm:$0xff] }
   0xa   :  { %129 = vmatpush.bf16.msra.mxu1 %v316_v6 }
   0xd   :  { %213 = vmatpush.bf16.msra.mxu2 %v324_v14 }
   0xe   :  { %130 = vmatpush.bf16.msra.mxu1 %v315_v7 }
  0x11   :  { %214 = vmatpush.bf16.msra.mxu2 %v323_v15 }
  0x12   :  { %131 = vmatpush.bf16.msra.mxu1 %v314_v8 }
  0x15   :  { %215 = vmatpush.bf16.msra.mxu2 %v322_v16 }
  0x16   :  { %132 = vmatpush.bf16.msra.mxu1 %v313_v9 }
  0x19   :  { %216 = vmatpush.bf16.msra.mxu2 %v321_v17 }
  0x1a   :  { %133 = vmatpush.bf16.msra.mxu1 %v312_v10 }
  0x1d   :  { %217 = vmatpush.bf16.msra.mxu2 %v320_v25 }
  0x1e   :  { %134 = vmatpush.bf16.msra.mxu1 %v311_v11 }
  0x21   :  { %218 = vmatpush.bf16.msra.mxu2 %v319_v26 }
  0x83   :  { %v52_v19 = vpop.f32.mrf.mxu0 }
  0x84   :  { %v53_v20 = vadd.f32 %v330_v18, %v52_v19 }
  0x86   :  { %v56_v21 = vmul.f32 0.1, %v53_v20 }
  0x88   :  { %v57_v22 = vmax.f32 %v53_v20, %v56_v21 }
  0x8a   :  { %v58_v23 = vpack.c.bf16 %v57_v22, %v57_v22 }
  0x8b   :  { %v54_v24 = vpop.f32.mrf.mxu0 }
  0x8c   :  { %135 = vmatmul.bf16.vlgmr.msra.gmra.mxu1 %v58_v23 }
 0x109   :  { %v136_v28 = vpop.f32.mrf.mxu1 }
 0x10a   :  { %v137_v29 = vadd.f32 %v331_v27, %v136_v28 }
 0x10c   :  { %v140_v30 = vmul.f32 0.1, %v137_v29 }
 0x10e   :  { %v141_v31 = vmax.f32 %v137_v29, %v140_v30 }
 0x110   :  { %v142_v32 = vpack.c.bf16 %v141_v31, %v141_v31 }
 0x111   :  { %v138_v33 = vpop.f32.mrf.mxu1 }
 0x112   :  { %219 = vmatmul.bf16.vlgmr.msra.gmra.mxu2 %v142_v32 }
 0x195   :  { %v220_v35 = vpop.f32.mrf.mxu2 }
 0x196   :  { %v221_v36 = vadd.f32 %v332_v34, %v220_v35 }
 0x198   :  { %v224_v37 = vmul.f32 0.1, %v221_v36 }
 0x19a   :  { %v225_v38 = vmax.f32 %v221_v36, %v224_v37 }
 0x19c   :  { %227 = vst.msk [vmem:[#allocation2] sm:$0xff] %vm226_vm2, %v225_v38 }
 0x19d   :  { %v222_v39 = vpop.f32.mrf.mxu2 }
 0x19e   :  { %231 = vsyncadd [#allocation3], 96  ;;  %s234_s14 = sshll.u32 %s475_s7, 4  ;;  %s359_s15 = smov [#allocation2]   ;;  %s235_s14 = int_to_ptr.hbm [resolvable:$true] %s234_s14 }
 0x19f   :  { %s232_s16 = sshll.u32 %s359_s15, 4  ;;  %s360_s17 = smov 32   ;;  %s233_s16 = int_to_ptr.vmem [resolvable:$true] %s232_s16 }
 0x1a0   :  { %s361_s18 = smov 2  }
 0x1a1   :  { %240 = dma.vmem_to_hbm [thread:$0]  %s233_s16, 32, %s235_s14, [#allocation3], %s360_s17, %s360_s17, %s361_s18  }
 0x1a2   :  { %357 = dma.done.wait [#allocation3], 128  }
 0x1a3   :  { %358 = vsyncadd [#allocation3], 4294967168 }
 0x1a4   :  { %245 = vsyncpa [#allocation3], 1 }

</bundles_post_ra>
